<compile_context>
chip_gen: v7x
topology: tpu7x:2x2x1
jax: 0.10.0
libtpu: 0.0.40
codegen_flags: <defaults>
</compile_context>

<pallas_src>
import jax
import jax.numpy as jnp
import numpy as np
from jax.experimental import pallas as pl
from jax.experimental.pallas import tpu as pltpu


def _basic_block_kernel(x_ref, m1_ref, b1_ref, m2_ref, b2_ref, o_ref):
    """Fused conv3x3+BN+ReLU x2 on a B_TILE batch tile.

    x_ref:  [B, H+2, W*Cin]  bf16  lane-packed, H-halo-padded input slab
    m1_ref: [3, W*Cin, W*C]  bf16  banded conv1 weights (BN1 scale folded in)
    b1_ref: [1, W*C]         f32   BN1 bias, tiled per x position
    m2_ref: [3, W*C,  W*C]   bf16  banded conv2 weights (BN2 scale folded in)
    b2_ref: [1, W*C]         f32   BN2 bias, tiled per x position
    o_ref:  [B, H, W*C]      f32   lane-dense output slab
    """
    b, hp2, _ = x_ref.shape
    h = hp2 - 2
    wc = o_ref.shape[2]

    def banded_conv(src, m_ref):
        # src: (B, H+2, K) bf16 value; dy shifts are sublane row offsets.
        k = src.shape[2]
        acc = jnp.zeros((b * h, wc), jnp.float32)
        for dy in range(3):
            lhs = src[:, dy:dy + h, :].reshape(b * h, k)
            acc = acc + jnp.dot(lhs, m_ref[dy],
                                preferred_element_type=jnp.float32)
        return acc

    # ---- stage 1: banded conv + (folded-BN) bias + ReLU --------------------
    y1 = jnp.maximum(banded_conv(x_ref[...], m1_ref) + b1_ref[...], 0.0)

    # ---- stage 2: re-pad rows on-chip (halo rows only), cast once to bf16 --
    zrow = jnp.zeros((b, 1, wc), jnp.float32)
    mid = jnp.concatenate([zrow, y1.reshape(b, h, wc), zrow],
                          axis=1).astype(jnp.bfloat16)          # (B, H+2, W*C)
    y2 = jnp.maximum(banded_conv(mid, m2_ref) + b2_ref[...], 0.0)

    # Lane-dense store (minor dim = W*C = full 128-lane rows here).
    # TODO(synk): emit bf16 here if the downstream layer accepts it (halves
    #             HBM writeback); kept f32 to match the PyTorch module dtype.
    o_ref[...] = y2.reshape(b, h, wc).astype(o_ref.dtype)


def _pick_b_tile(n, h, w, min_rows=512, max_rows=4096):
    """Images per grid step: enough rows to amortize the ~0.35us grid-step
    overhead, capped so the f32 accumulator stays small; prefer >= 2 grid
    steps (both v7x TensorCores) when the batch allows it."""
    divisors = [d for d in range(1, n + 1) if n % d == 0]
    for d in reversed(divisors):
        if n // d >= 2 and min_rows <= d * h * w <= max_rows:
            return d
    for d in reversed(divisors):
        if d * h * w <= max_rows:
            return d
    return 1


def _banded_conv_weights(w_hwio, scale, width):
    """Build the per-dy banded matmul weights.

    M[dy, x_in*Ci + ci, x_out*Co + co] = w[dy, x_in - x_out + 1, ci, co]
    (zero outside the 3-wide band), with the BN scale folded into w. The band
    also implements the horizontal SAME padding implicitly.
    """
    kh, kw, ci, co = w_hwio.shape
    wf = w_hwio * scale[None, None, None, :]
    x_in = jnp.arange(width)[:, None]
    x_out = jnp.arange(width)[None, :]
    dx = x_in - x_out + (kw // 2)
    valid = ((dx >= 0) & (dx < kw)).astype(wf.dtype)
    dxc = jnp.clip(dx, 0, kw - 1)
    band = wf[:, dxc, :, :]                                # (kh, Win, Wout, ci, co)
    band = band * valid[None, :, :, None, None]
    band = jnp.transpose(band, (0, 1, 3, 2, 4))            # (kh, Win, ci, Wout, co)
    return band.reshape(kh, width * ci, width * co).astype(jnp.bfloat16)


def basic_block_fused(x_slab, m1, b1, m2, b2, *, b_tile):
    """x_slab: (N, H+2, W*Cin) bf16 lane-packed padded input. Returns
    (N, H, W*C) f32 lane-dense output."""
    n, hp2, wci = x_slab.shape
    h = hp2 - 2
    wc = m1.shape[2]
    assert n % b_tile == 0

    return pl.pallas_call(
        _basic_block_kernel,
        out_shape=jax.ShapeDtypeStruct((n, h, wc), jnp.float32),
        grid_spec=pltpu.PrefetchScalarGridSpec(
            num_scalar_prefetch=0,
            grid=(n // b_tile,),
            in_specs=[
                pl.BlockSpec((b_tile, hp2, wci), lambda i: (i, 0, 0)),
                pl.BlockSpec(m1.shape, lambda i: (0, 0, 0)),
                pl.BlockSpec(b1.shape, lambda i: (0, 0)),
                pl.BlockSpec(m2.shape, lambda i: (0, 0, 0)),
                pl.BlockSpec(b2.shape, lambda i: (0, 0)),
            ],
            out_specs=pl.BlockSpec((b_tile, h, wc), lambda i: (i, 0, 0)),
        ),
        # Per-step VMEM here is tiny (<0.5 MiB incl. double-buffering). At
        # ResNet-scale H/W/C, set vmem_limit_bytes explicitly and tile H in
        # strips of 8 (v7x has only 64 MiB physical VMEM).
        compiler_params=pltpu.CompilerParams(
            dimension_semantics=("parallel",)),
    )(x_slab, m1, b1, m2, b2)


def fold_bn(gamma, beta, running_mean, running_var, eps=1e-5):
    scale = gamma / jnp.sqrt(running_var + eps)
    bias = beta - running_mean * scale
    return scale, bias


@jax.jit
def basic_block_forward(x_nchw, params):
    n, c_in, h, w = x_nchw.shape
    c = params["w1"].shape[-1]

    s1, bias1 = fold_bn(params["gamma1"], params["beta1"],
                        params["mean1"], params["var1"])
    s2, bias2 = fold_bn(params["gamma2"], params["beta2"],
                        params["mean2"], params["var2"])

    # BN scale folded into the banded conv weights; kernel only adds bias+ReLU.
    m1 = _banded_conv_weights(params["w1"], s1, w)     # (3, W*Cin, W*C) bf16
    m2 = _banded_conv_weights(params["w2"], s2, w)     # (3, W*C,  W*C) bf16
    b1 = jnp.tile(bias1, w).reshape(1, w * c).astype(jnp.float32)
    b2 = jnp.tile(bias2, w).reshape(1, w * c).astype(jnp.float32)

    # Layout plumbing (one fused XLA pass): NCHW -> lane-packed (lane = x*Cin
    # + ci), H-halo-padded, bf16. NHWC end-to-end callers skip the transpose.
    x = jnp.transpose(x_nchw, (0, 2, 3, 1)).reshape(n, h, w * c_in)
    x = jnp.pad(x, ((0, 0), (1, 1), (0, 0))).astype(jnp.bfloat16)

    b_tile = _pick_b_tile(n, h, w)
    out = basic_block_fused(x, m1, b1, m2, b2, b_tile=b_tile)   # (N, H, W*C)
    return jnp.transpose(out.reshape(n, h, w, c), (0, 3, 1, 2))  # -> NCHW


def _reference_forward(x_nchw, params):
    """Plain-JAX (f32) reference for validation."""
    x = jnp.transpose(x_nchw, (0, 2, 3, 1))

    def stage(x, w, gamma, beta, mean, var):
        y = jax.lax.conv_general_dilated(
            x, w, window_strides=(1, 1), padding="SAME",
            dimension_numbers=("NHWC", "HWIO", "NHWC"))
        s, b = fold_bn(gamma, beta, mean, var)
        return jnp.maximum(y * s + b, 0.0)

    out = stage(x, params["w1"], params["gamma1"], params["beta1"],
                params["mean1"], params["var1"])
    out = stage(out, params["w2"], params["gamma2"], params["beta2"],
                params["mean2"], params["var2"])
    return jnp.transpose(out, (0, 3, 1, 2))


if __name__ == "__main__":
    # BasicBlock(in_planes=4, planes=8, stride=1); x: [N=2, C=4, H=16, W=16]
    in_planes, planes = 4, 8
    N, H, W = 2, 16, 16

    key = jax.random.PRNGKey(0)
    k_x, k_w1, k_w2 = jax.random.split(key, 3)

    x = jax.random.normal(k_x, (N, in_planes, H, W), dtype=jnp.float32)

    params = {
        # conv weights in HWIO (PyTorch OIHW [Cout,Cin,3,3] -> [3,3,Cin,Cout])
        "w1": 0.1 * jax.random.normal(k_w1, (3, 3, in_planes, planes),
                                      jnp.float32),
        "w2": 0.1 * jax.random.normal(k_w2, (3, 3, planes, planes),
                                      jnp.float32),
        # BN params (deterministic); running stats at init (eval mode)
        "gamma1": 1.0 + 0.05 * jnp.arange(planes, dtype=jnp.float32),
        "beta1": 0.01 * jnp.arange(planes, dtype=jnp.float32),
        "mean1": jnp.zeros((planes,), jnp.float32),
        "var1": jnp.ones((planes,), jnp.float32),
        "gamma2": 1.0 - 0.03 * jnp.arange(planes, dtype=jnp.float32),
        "beta2": -0.02 * jnp.arange(planes, dtype=jnp.float32),
        "mean2": jnp.zeros((planes,), jnp.float32),
        "var2": jnp.ones((planes,), jnp.float32),
    }

    out = jax.block_until_ready(basic_block_forward(x, params))
    ref = jax.block_until_ready(_reference_forward(x, params))

    assert out.shape == (N, planes, H, W), out.shape
    # Tolerance sized for bf16 MXU operands with f32 accumulation.
    np.testing.assert_allclose(np.asarray(out), np.asarray(ref),
                               rtol=2e-2, atol=2e-2)

    print("KERNEL_OK")
</pallas_src>

<mosaic_0001>
module attributes {stable_mosaic.version = 11 : i64} {
  func.func @_basic_block_kernel(%arg0: i32, %arg1: memref<2x18x64xbf16, #tpu.memory_space<vmem>>, %arg2: memref<3x64x128xbf16, #tpu.memory_space<vmem>>, %arg3: memref<1x128xf32, #tpu.memory_space<vmem>>, %arg4: memref<3x128x128xbf16, #tpu.memory_space<vmem>>, %arg5: memref<1x128xf32, #tpu.memory_space<vmem>>, %arg6: memref<2x16x128xf32, #tpu.memory_space<vmem>>) attributes {dimension_semantics = [#tpu.dimension_semantics<parallel>], iteration_bounds = array<i64: 1>, scalar_prefetch = 0 : i64, scratch_operands = 0 : i64, tpu.core_type = #tpu.core_type<tc>, window_params = [{transform_indices = @transform_0, window_bounds = array<i64: 2, 18, 64>}, {pipeline_mode = #tpu.pipeline_mode<synchronous>, transform_indices = @transform_1, window_bounds = array<i64: 3, 64, 128>}, {pipeline_mode = #tpu.pipeline_mode<synchronous>, transform_indices = @transform_2, window_bounds = array<i64: 1, 128>}, {pipeline_mode = #tpu.pipeline_mode<synchronous>, transform_indices = @transform_3, window_bounds = array<i64: 3, 128, 128>}, {pipeline_mode = #tpu.pipeline_mode<synchronous>, transform_indices = @transform_4, window_bounds = array<i64: 1, 128>}, {transform_indices = @transform_5, window_bounds = array<i64: 2, 16, 128>}]} {
    %c0 = arith.constant 0 : index
    %c0_0 = arith.constant 0 : index
    %c0_1 = arith.constant 0 : index
    %0 = vector.load %arg1[%c0, %c0_0, %c0_1] : memref<2x18x64xbf16, #tpu.memory_space<vmem>>, vector<2x18x64xbf16>
    %cst = arith.constant 0.000000e+00 : f32
    %1 = vector.broadcast %cst : f32 to vector<32x128xf32>
    %2 = vector.extract_strided_slice %0 {offsets = [0, 0, 0], sizes = [2, 16, 64], strides = [1, 1, 1]} : vector<2x18x64xbf16> to vector<2x16x64xbf16>
    %3 = vector.shape_cast %2 : vector<2x16x64xbf16> to vector<32x64xbf16>
    %c0_2 = arith.constant 0 : index
    %c0_3 = arith.constant 0 : index
    %c0_4 = arith.constant 0 : index
    %4 = vector.load %arg2[%c0_2, %c0_3, %c0_4] : memref<3x64x128xbf16, #tpu.memory_space<vmem>>, vector<1x64x128xbf16>
    %5 = vector.shape_cast %4 : vector<1x64x128xbf16> to vector<64x128xbf16>
    %cst_5 = arith.constant dense<0.000000e+00> : vector<32x128xf32>
    %6 = tpu.matmul %3, %5, %cst_5 {dimension_numbers = #tpu.dot_dimension_numbers<[1], [0], [0], [1], [0, 0, 1, 1], [], []>} : vector<32x64xbf16>, vector<64x128xbf16>, vector<32x128xf32> -> vector<32x128xf32>
    %7 = arith.addf %1, %6 : vector<32x128xf32>
    %8 = vector.extract_strided_slice %0 {offsets = [0, 1, 0], sizes = [2, 16, 64], strides = [1, 1, 1]} : vector<2x18x64xbf16> to vector<2x16x64xbf16>
    %9 = vector.shape_cast %8 : vector<2x16x64xbf16> to vector<32x64xbf16>
    %c1 = arith.constant 1 : index
    %c0_6 = arith.constant 0 : index
    %c0_7 = arith.constant 0 : index
    %10 = vector.load %arg2[%c1, %c0_6, %c0_7] : memref<3x64x128xbf16, #tpu.memory_space<vmem>>, vector<1x64x128xbf16>
    %11 = vector.shape_cast %10 : vector<1x64x128xbf16> to vector<64x128xbf16>
    %cst_8 = arith.constant dense<0.000000e+00> : vector<32x128xf32>
    %12 = tpu.matmul %9, %11, %cst_8 {dimension_numbers = #tpu.dot_dimension_numbers<[1], [0], [0], [1], [0, 0, 1, 1], [], []>} : vector<32x64xbf16>, vector<64x128xbf16>, vector<32x128xf32> -> vector<32x128xf32>
    %13 = arith.addf %7, %12 : vector<32x128xf32>
    %14 = vector.extract_strided_slice %0 {offsets = [0, 2, 0], sizes = [2, 16, 64], strides = [1, 1, 1]} : vector<2x18x64xbf16> to vector<2x16x64xbf16>
    %15 = vector.shape_cast %14 : vector<2x16x64xbf16> to vector<32x64xbf16>
    %c2 = arith.constant 2 : index
    %c0_9 = arith.constant 0 : index
    %c0_10 = arith.constant 0 : index
    %16 = vector.load %arg2[%c2, %c0_9, %c0_10] : memref<3x64x128xbf16, #tpu.memory_space<vmem>>, vector<1x64x128xbf16>
    %17 = vector.shape_cast %16 : vector<1x64x128xbf16> to vector<64x128xbf16>
    %cst_11 = arith.constant dense<0.000000e+00> : vector<32x128xf32>
    %18 = tpu.matmul %15, %17, %cst_11 {dimension_numbers = #tpu.dot_dimension_numbers<[1], [0], [0], [1], [0, 0, 1, 1], [], []>} : vector<32x64xbf16>, vector<64x128xbf16>, vector<32x128xf32> -> vector<32x128xf32>
    %19 = arith.addf %13, %18 : vector<32x128xf32>
    %c0_12 = arith.constant 0 : index
    %c0_13 = arith.constant 0 : index
    %20 = vector.load %arg3[%c0_12, %c0_13] : memref<1x128xf32, #tpu.memory_space<vmem>>, vector<1x128xf32>
    %21 = vector.broadcast %20 : vector<1x128xf32> to vector<32x128xf32>
    %22 = arith.addf %19, %21 : vector<32x128xf32>
    %cst_14 = arith.constant 0.000000e+00 : f32
    %23 = vector.broadcast %cst_14 : f32 to vector<32x128xf32>
    %24 = arith.maximumf %22, %23 : vector<32x128xf32>
    %cst_15 = arith.constant 0.000000e+00 : f32
    %25 = vector.broadcast %cst_15 : f32 to vector<2x1x128xf32>
    %26 = vector.shape_cast %24 : vector<32x128xf32> to vector<2x16x128xf32>
    %27 = tpu.concatenate %25, %26, %25 in 1 : vector<2x1x128xf32>, vector<2x16x128xf32>, vector<2x1x128xf32> -> vector<2x18x128xf32>
    %28 = arith.truncf %27 : vector<2x18x128xf32> to vector<2x18x128xbf16>
    %cst_16 = arith.constant 0.000000e+00 : f32
    %29 = vector.broadcast %cst_16 : f32 to vector<32x128xf32>
    %30 = vector.extract_strided_slice %28 {offsets = [0, 0, 0], sizes = [2, 16, 128], strides = [1, 1, 1]} : vector<2x18x128xbf16> to vector<2x16x128xbf16>
    %31 = vector.shape_cast %30 : vector<2x16x128xbf16> to vector<32x128xbf16>
    %c0_17 = arith.constant 0 : index
    %c0_18 = arith.constant 0 : index
    %c0_19 = arith.constant 0 : index
    %32 = vector.load %arg4[%c0_17, %c0_18, %c0_19] : memref<3x128x128xbf16, #tpu.memory_space<vmem>>, vector<1x128x128xbf16>
    %33 = vector.shape_cast %32 : vector<1x128x128xbf16> to vector<128x128xbf16>
    %cst_20 = arith.constant dense<0.000000e+00> : vector<32x128xf32>
    %34 = tpu.matmul %31, %33, %cst_20 {dimension_numbers = #tpu.dot_dimension_numbers<[1], [0], [0], [1], [0, 0, 1, 1], [], []>} : vector<32x128xbf16>, vector<128x128xbf16>, vector<32x128xf32> -> vector<32x128xf32>
    %35 = arith.addf %29, %34 : vector<32x128xf32>
    %36 = vector.extract_strided_slice %28 {offsets = [0, 1, 0], sizes = [2, 16, 128], strides = [1, 1, 1]} : vector<2x18x128xbf16> to vector<2x16x128xbf16>
    %37 = vector.shape_cast %36 : vector<2x16x128xbf16> to vector<32x128xbf16>
    %c1_21 = arith.constant 1 : index
    %c0_22 = arith.constant 0 : index
    %c0_23 = arith.constant 0 : index
    %38 = vector.load %arg4[%c1_21, %c0_22, %c0_23] : memref<3x128x128xbf16, #tpu.memory_space<vmem>>, vector<1x128x128xbf16>
    %39 = vector.shape_cast %38 : vector<1x128x128xbf16> to vector<128x128xbf16>
    %cst_24 = arith.constant dense<0.000000e+00> : vector<32x128xf32>
    %40 = tpu.matmul %37, %39, %cst_24 {dimension_numbers = #tpu.dot_dimension_numbers<[1], [0], [0], [1], [0, 0, 1, 1], [], []>} : vector<32x128xbf16>, vector<128x128xbf16>, vector<32x128xf32> -> vector<32x128xf32>
    %41 = arith.addf %35, %40 : vector<32x128xf32>
    %42 = vector.extract_strided_slice %28 {offsets = [0, 2, 0], sizes = [2, 16, 128], strides = [1, 1, 1]} : vector<2x18x128xbf16> to vector<2x16x128xbf16>
    %43 = vector.shape_cast %42 : vector<2x16x128xbf16> to vector<32x128xbf16>
    %c2_25 = arith.constant 2 : index
    %c0_26 = arith.constant 0 : index
    %c0_27 = arith.constant 0 : index
    %44 = vector.load %arg4[%c2_25, %c0_26, %c0_27] : memref<3x128x128xbf16, #tpu.memory_space<vmem>>, vector<1x128x128xbf16>
    %45 = vector.shape_cast %44 : vector<1x128x128xbf16> to vector<128x128xbf16>
    %cst_28 = arith.constant dense<0.000000e+00> : vector<32x128xf32>
    %46 = tpu.matmul %43, %45, %cst_28 {dimension_numbers = #tpu.dot_dimension_numbers<[1], [0], [0], [1], [0, 0, 1, 1], [], []>} : vector<32x128xbf16>, vector<128x128xbf16>, vector<32x128xf32> -> vector<32x128xf32>
    %47 = arith.addf %41, %46 : vector<32x128xf32>
    %c0_29 = arith.constant 0 : index
    %c0_30 = arith.constant 0 : index
    %48 = vector.load %arg5[%c0_29, %c0_30] : memref<1x128xf32, #tpu.memory_space<vmem>>, vector<1x128xf32>
    %49 = vector.broadcast %48 : vector<1x128xf32> to vector<32x128xf32>
    %50 = arith.addf %47, %49 : vector<32x128xf32>
    %cst_31 = arith.constant 0.000000e+00 : f32
    %51 = vector.broadcast %cst_31 : f32 to vector<32x128xf32>
    %52 = arith.maximumf %50, %51 : vector<32x128xf32>
    %53 = vector.shape_cast %52 : vector<32x128xf32> to vector<2x16x128xf32>
    %c0_32 = arith.constant 0 : index
    %c0_33 = arith.constant 0 : index
    %c0_34 = arith.constant 0 : index
    %54 = vector.load %arg6[%c0_32, %c0_33, %c0_34] : memref<2x16x128xf32, #tpu.memory_space<vmem>>, vector<2x16x128xf32>
    tpu.vector_store %arg6[%c0_32, %c0_33, %c0_34], %53 {strides = array<i32>} : memref<2x16x128xf32, #tpu.memory_space<vmem>>, vector<2x16x128xf32>,
    return
  }
  func.func @transform_0(%arg0: i32) -> (i32, i32, i32) {
    %c0_i32 = arith.constant 0 : i32
    %c0_i32_0 = arith.constant 0 : i32
    %c0_i32_1 = arith.constant 0 : i32
    return %arg0, %c0_i32, %c0_i32_0 : i32, i32, i32
  }
  func.func @transform_1(%arg0: i32) -> (i32, i32, i32) {
    %c0_i32 = arith.constant 0 : i32
    %c0_i32_0 = arith.constant 0 : i32
    %c0_i32_1 = arith.constant 0 : i32
    %c0_i32_2 = arith.constant 0 : i32
    return %c0_i32, %c0_i32_0, %c0_i32_1 : i32, i32, i32
  }
  func.func @transform_2(%arg0: i32) -> (i32, i32) {
    %c0_i32 = arith.constant 0 : i32
    %c0_i32_0 = arith.constant 0 : i32
    %c0_i32_1 = arith.constant 0 : i32
    return %c0_i32, %c0_i32_0 : i32, i32
  }
  func.func @transform_3(%arg0: i32) -> (i32, i32, i32) {
    %c0_i32 = arith.constant 0 : i32
    %c0_i32_0 = arith.constant 0 : i32
    %c0_i32_1 = arith.constant 0 : i32
    %c0_i32_2 = arith.constant 0 : i32
    return %c0_i32, %c0_i32_0, %c0_i32_1 : i32, i32, i32
  }
  func.func @transform_4(%arg0: i32) -> (i32, i32) {
    %c0_i32 = arith.constant 0 : i32
    %c0_i32_0 = arith.constant 0 : i32
    %c0_i32_1 = arith.constant 0 : i32
    return %c0_i32, %c0_i32_0 : i32, i32
  }
  func.func @transform_5(%arg0: i32) -> (i32, i32, i32) {
    %c0_i32 = arith.constant 0 : i32
    %c0_i32_0 = arith.constant 0 : i32
    %c0_i32_1 = arith.constant 0 : i32
    return %arg0, %c0_i32, %c0_i32_0 : i32, i32, i32
  }
}

</mosaic_0001>

<bundles_post_ra>
// kernel: tile.13
= control target key start
LH: loop header
LB: loop body
LE: loop exit
PB: predicated region body
PF: predicated region fallthrough
CT: control target
= control target key end

     0   :  { %s28_s0 = inlined_call_operand.vmem [shape: f32[8], index: 0, kind: input, shape index: {}]   ;;  %s29_s1 = inlined_call_operand.vmem [shape: f32[16,8], index: 1, kind: output, shape index: {}]  }
   0x1   :  { %v4_v0 = vld [vmem:[%s28_s0] ss:$0 sm:$0xff] }
   0x2   :  { %5 = vst [vmem:[%s29_s1] sm:$0xff] %v4_v0  ;;  %8 = vst [vmem:[%s29_s1 + $0x8] sm:$0xff] %v4_v0 }

// kernel: tile.14
= control target key start
LH: loop header
LB: loop body
LE: loop exit
PB: predicated region body
PF: predicated region fallthrough
CT: control target
= control target key end

     0   :  { %s131_s10 = smov 120   ;;  %s132_s11 = smov 104   ;;  %vm3_vm0 = vcmask 64512   ;;  %vm9_vm1 = vcmask 1048512   ;;  %vm15_vm2 = vcmask 982912   ;;  %vm21_vm3 = vcmask 917312   ;;  %s207_s0 = inlined_call_operand.vmem [shape: f32[16,8], index: 0, kind: input, shape index: {}]   ;;  %s208_s1 = inlined_call_operand.vmem [shape: f32[1,128], index: 1, kind: output, shape index: {}]  }
   0x1   :  { %v101_v0 = vld [vmem:[%s207_s0 + $0xf] sm:$0x1]   ;;  %v103_v1 = vld [vmem:[%s207_s0 + $0xd] sm:$0x1]   ;;  %v102_v2 = vld [vmem:[%s207_s0 + $0xe] sm:$0x1]  }
   0x2   :  { %7 = vrot.lane.b32.xlu0 %v101_v0, %s131_s10  ;;  %19 = vrot.lane.b32.xlu1 %v103_v1, %s132_s11  ;;  %v104_v3 = vld [vmem:[%s207_s0 + $0xc] sm:$0x1]   ;;  %s133_s16 = smov 112   ;;  %s134_s17 = smov 96   ;;  %v105_v4 = vld [vmem:[%s207_s0 + $0xb] sm:$0x1]  }
   0x3   :  { %v106_v5 = vld [vmem:[%s207_s0 + $0xa] sm:$0x1]   ;;  %v2_v6 = vld [vmem:[%s207_s0] sm:$0x1]   ;;  %s135_s24 = smov 88   ;;  %s136_s25 = smov 80  }
   0x4   :  { %4 = vst.msk [vmem:[#allocation0] sm:$0x1] %vm3_vm0, %v2_v6   ;;  %v107_v7 = vld [vmem:[%s207_s0 + $0x9] sm:$0x1]   ;;  %v108_v8 = vld [vmem:[%s207_s0 + $0x8] sm:$0x1]  }
   0x5   :  { %s137_s30 = smov 72   ;;  %s138_s2 = smov 64   ;;  %v109_v9 = vld [vmem:[%s207_s0 + $0x7] sm:$0x1]   ;;  %v110_v10 = vld [vmem:[%s207_s0 + $0x6] sm:$0x1]  }
   0x6   :  { %13 = vrot.lane.b32.xlu0 %v102_v2, %s133_s16  ;;  %25 = vrot.lane.b32.xlu1 %v104_v3, %s134_s17  ;;  %s139_s7 = smov 56   ;;  %s140_s8 = smov 48   ;;  %v111_v11 = vld [vmem:[%s207_s0 + $0x5] sm:$0x1]   ;;  %v112_v12 = vld [vmem:[%s207_s0 + $0x4] sm:$0x1]  }
   0x7   :  { %s141_s13 = smov 40   ;;  %s142_s14 = smov 32   ;;  %v113_v13 = vld [vmem:[%s207_s0 + $0x3] sm:$0x1]   ;;  %v114_v14 = vld [vmem:[%s207_s0 + $0x2] sm:$0x1]  }
   0x8   :  { %s143_s19 = smov 24   ;;  %s144_s20 = smov 16   ;;  %v115_v15 = vld [vmem:[%s207_s0 + $0x1] sm:$0x1]   ;;  %vm27_vm4 = vcmask 851712   ;;  %vm33_vm5 = vcmask 786112  }
   0x9   :  { %s145_s0 = smov 8   ;;  %vm39_vm6 = vcmask 720512   ;;  %vm45_vm7 = vcmask 654912   ;;  %vm51_vm8 = vcmask 589312   ;;  %vm57_vm9 = vcmask 523712  }
   0xa   :  { %31 = vrot.lane.b32.xlu0 %v105_v4, %s135_s24  ;;  %37 = vrot.lane.b32.xlu1 %v106_v5, %s136_s25  ;;  %vm63_vm10 = vcmask 458112   ;;  %vm69_vm11 = vcmask 392512   ;;  %vm75_vm12 = vcmask 326912   ;;  %vm81_vm13 = vcmask 261312  }
   0xb   :  { %vm87_vm14 = vcmask 195712   ;;  %vm93_vm15 = vcmask 130112  }
   0xe   :  { %43 = vrot.lane.b32.xlu0 %v107_v7, %s137_s30  ;;  %49 = vrot.lane.b32.xlu1 %v108_v8, %s138_s2 }
  0x12   :  { %55 = vrot.lane.b32.xlu0 %v109_v9, %s139_s7  ;;  %61 = vrot.lane.b32.xlu1 %v110_v10, %s140_s8 }
  0x16   :  { %67 = vrot.lane.b32.xlu0 %v111_v11, %s141_s13  ;;  %73 = vrot.lane.b32.xlu1 %v112_v12, %s142_s14 }
  0x1a   :  { %79 = vrot.lane.b32.xlu0 %v113_v13, %s143_s19  ;;  %85 = vrot.lane.b32.xlu1 %v114_v14, %s144_s20 }
  0x1e   :  { %91 = vrot.lane.b32.xlu0 %v115_v15, %s145_s0 }
  0x74   :  { %v8_v16 = vpop.permute.xlu0 %7   ;;  %v20_v17 = vpop.permute.xlu1 %19  }
  0x75   :  { %10 = vst.msk [vmem:[#allocation0] sm:$0x1] %vm9_vm1, %v8_v16  }
  0x78   :  { %v14_v18 = vpop.permute.xlu0 %13   ;;  %v26_v19 = vpop.permute.xlu1 %25  }
  0x79   :  { %16 = vst.msk [vmem:[#allocation0] sm:$0x1] %vm15_vm2, %v14_v18  }
  0x7a   :  { %22 = vst.msk [vmem:[#allocation0] sm:$0x1] %vm21_vm3, %v20_v17  }
  0x7b   :  { %28 = vst.msk [vmem:[#allocation0] sm:$0x1] %vm27_vm4, %v26_v19  }
  0x7c   :  { %v32_v20 = vpop.permute.xlu0 %31   ;;  %v38_v21 = vpop.permute.xlu1 %37  }
  0x7d   :  { %34 = vst.msk [vmem:[#allocation0] sm:$0x1] %vm33_vm5, %v32_v20  }
  0x7e   :  { %40 = vst.msk [vmem:[#allocation0] sm:$0x1] %vm39_vm6, %v38_v21  }
  0x80   :  { %v44_v22 = vpop.permute.xlu0 %43   ;;  %v50_v23 = vpop.permute.xlu1 %49  }
  0x81   :  { %46 = vst.msk [vmem:[#allocation0] sm:$0x1] %vm45_vm7, %v44_v22  }
  0x82   :  { %52 = vst.msk [vmem:[#allocation0] sm:$0x1] %vm51_vm8, %v50_v23  }
  0x84   :  { %v56_v24 = vpop.permute.xlu0 %55   ;;  %v62_v25 = vpop.permute.xlu1 %61  }
  0x85   :  { %58 = vst.msk [vmem:[#allocation0] sm:$0x1] %vm57_vm9, %v56_v24  }
  0x86   :  { %64 = vst.msk [vmem:[#allocation0] sm:$0x1] %vm63_vm10, %v62_v25  }
  0x88   :  { %v68_v26 = vpop.permute.xlu0 %67   ;;  %v74_v27 = vpop.permute.xlu1 %73  }
  0x89   :  { %70 = vst.msk [vmem:[#allocation0] sm:$0x1] %vm69_vm11, %v68_v26  }
  0x8a   :  { %76 = vst.msk [vmem:[#allocation0] sm:$0x1] %vm75_vm12, %v74_v27  }
  0x8c   :  { %v80_v28 = vpop.permute.xlu0 %79   ;;  %v86_v29 = vpop.permute.xlu1 %85  }
  0x8d   :  { %82 = vst.msk [vmem:[#allocation0] sm:$0x1] %vm81_vm13, %v80_v28  }
  0x8e   :  { %88 = vst.msk [vmem:[#allocation0] sm:$0x1] %vm87_vm14, %v86_v29  }
  0x90   :  { %v92_v30 = vpop.permute.xlu0 %91  }
  0x91   :  { %94 = vst.msk [vmem:[#allocation0] sm:$0x1] %vm93_vm15, %v92_v30  }
  0x98   :  { %v98_v31 = vld [vmem:[#allocation0] sm:$0x1] }
  0x99   :  { %100 = vst [vmem:[%s208_s1] sm:$0x1] %v98_v31 }

// kernel: basic_block_forward.1
= control target key start
LH: loop header
LB: loop body
LE: loop exit
PB: predicated region body
PF: predicated region fallthrough
CT: control target
= control target key end

     0   :  { %vm35_vm0 = vsmask.f32 3328  ;;  %vm36_vm1 = vsmask.f32 7440  ;;  %vm125_vm3 = vcmask 523264   ;;  %vm272_vm4 = vcmask 1042432   ;;  %s1383_s1 = inlined_call_operand.vmem [shape: bf16[3,64,128], index: 1, kind: input, shape index: {}]   ;;  %s1384_s0 = inlined_call_operand.vmem [shape: bf16[2,18,64], index: 0, kind: input, shape index: {}]   ;;  %s1385_s3 = inlined_call_operand.vmem [shape: bf16[3,128,128], index: 3, kind: input, shape index: {}]   ;;  %s1386_s2 = inlined_call_operand.vmem [shape: f32[1,128], index: 2, kind: input, shape index: {}]   ;;  %s1387_s4 = inlined_call_operand.vmem [shape: f32[1,128], index: 4, kind: input, shape index: {}]   ;;  %s1388_s5 = inlined_call_operand.vmem [shape: f32[2,16,128], index: 5, kind: output, shape index: {}]  }
   0x1   :  { %v1104_v0 = vld [vmem:[%s1383_s1 + $0x20] sm:$0xff]   ;;  %v1105_v1 = vld [vmem:[%s1383_s1 + $0x28] sm:$0xff]   ;;  %v1106_v2 = vld [vmem:[%s1383_s1 + $0x30] sm:$0xff]   ;;  %vm273_vm5 = vcmask 1046532   ;;  %vm406_vm7 = vcmask 1040384   ;;  %vm1142_vm9 = vmmov 1  }
   0x2   :  { %991 = vmatprep.subr.bf16.mxu0 %v1104_v0  ;;  %v1185_v3 = vld [vmem:[%s1384_s0] sm:$0xf]  ;;  %v1190_v4 = vld [vmem:[%s1384_s0 + $0x4] sm:$0xf]  ;;  %v1195_v5 = vld [vmem:[%s1384_s0 + $0x8] sm:$0x1] }
   0x3   :  { %992 = vmatpush3.bf16.msra.mxu0 %v1104_v0  ;;  %v39_v6 = vshrl.u32 %v1185_v3, 16  ;;  %v42_v7 = vshll.u32 %v1185_v3, 16  ;;  %v48_v8 = vshll.u32 %v1190_v4, 16  ;;  %v52_v9 = vshrl.u32 %v1190_v4, 16  ;;  %v1107_v10 = vld [vmem:[%s1383_s1 + $0x38] sm:$0xff]   ;;  %vm1225_vm2 = vmor %vm35_vm0, %vm36_vm1  ;;  %v1108_v33 = vld [vmem:[%s1383_s1] sm:$0xff]  }
   0x4   :  { %993 = vmatprep.subr.bf16.mxu0 %v1105_v1  ;;  %v58_v11 = vshll.u32 %v1195_v5, 16  ;;  %v1208_v16 = vld [vmem:[%s1384_s0 + $0xc] sm:$0xf]  ;;  %v1213_v18 = vld [vmem:[%s1384_s0 + $0x10] sm:$0xf]  ;;  %v851_v46 = vcombine.low %v1185_v3, %v1190_v4  ;;  %v1118_v47 = vld [vmem:[%s1385_s3] sm:$0xff]  }
   0x5   :  { %v41_v12 = vrot.slane %v39_v6, 4  ;;  %v44_v13 = vrot.slane %v42_v7, 5  ;;  %v50_v14 = vrot.slane %v48_v8, 5  ;;  %v54_v15 = vrot.slane %v52_v9, 4  ;;  %v1218_v19 = vld [vmem:[%s1384_s0 + $0x14] sm:$0x1]  ;;  %1047 = vmatprep.subr.bf16.mxu1 %v1118_v47  ;;  %vm1264_vm6 = vmor %vm272_vm4, %vm273_vm5 }
   0x6   :  { %v60_v17 = vrot.slane %v58_v11, 5  ;;  %v63_v20 = vshrl.u32 %v1208_v16, 16  ;;  %v66_v23 = vshll.u32 %v1208_v16, 16  ;;  %v72_v24 = vshll.u32 %v1213_v18, 16  ;;  %v1109_v44 = vld [vmem:[%s1383_s1 + $0x8] sm:$0xff]   ;;  %1048 = vmatpush3.bf16.msra.mxu1 %v1118_v47  ;;  %v1121_v51 = vld [vmem:[%s1385_s3 + $0x10] sm:$0xff]   ;;  %vm910_vm8 = vmneg %vm406_vm7 }
   0x7   :  { %994 = vmatpush3.bf16.msra.mxu0 %v1105_v1  ;;  %v45_v21 = vor.u32 %v44_v13, %v41_v12  ;;  %v55_v22 = vor.u32 %v54_v15, %v50_v14  ;;  %v76_v27 = vshrl.u32 %v1213_v18, 16  ;;  %v82_v28 = vshll.u32 %v1218_v19, 16  ;;  %v1119_v49 = vld [vmem:[%s1385_s3 + $0x8] sm:$0xff]   ;;  %v1110_v52 = vld [vmem:[%s1383_s1 + $0x10] sm:$0xff]   ;;  %v1111_v56 = vld [vmem:[%s1383_s1 + $0x18] sm:$0xff]  }
   0x8   :  { %995 = vmatprep.subr.bf16.mxu0 %v1106_v2  ;;  %v65_v26 = vrot.slane %v63_v20, 4  ;;  %v68_v31 = vrot.slane %v66_v23, 5  ;;  %v74_v32 = vrot.slane %v72_v24, 5  ;;  %v277_v50 = vrot.slane %v1190_v4, 5  ;;  %1049 = vmatprep.subr.bf16.mxu1 %v1119_v49  ;;  %v1123_v58 = vld [vmem:[%s1385_s3 + $0x18] sm:$0xff]   ;;  %v1125_v59 = vld [vmem:[%s1385_s3 + $0x20] sm:$0xff]   ;;  %vm911_vm10 = vmpackc.low %vm1142_vm9, %vm910_vm8 }
   0x9   :  { %v46_v29 = vrot.slane %v45_v21, 4  ;;  %v56_v30 = vrot.slane %v55_v22, 4  ;;  %v78_v34 = vrot.slane %v76_v27, 4  ;;  %v84_v40 = vrot.slane %v82_v28, 5  ;;  %v1113_v60 = vld [vmem:[%s1383_s1 + $0x40] sm:$0xff]   ;;  %v1115_v0 = vld [vmem:[%s1383_s1 + $0x48] sm:$0xff]  }
   0xa   :  { %v69_v37 = vor.u32 %v68_v31, %v65_v26  ;;  %v280_v53 = vrot.slane %v1195_v5, 5  ;;  %v859_v55 = vrot.slane %v1185_v3, 9  ;;  %v279_v57 = vrot.slane %v277_v50, 4  ;;  %1050 = vmatpush3.bf16.msra.mxu1 %v1119_v49  ;;  %v1116_v3 = vld [vmem:[%s1383_s1 + $0x50] sm:$0xff]   ;;  %v1117_v7 = vld [vmem:[%s1383_s1 + $0x58] sm:$0xff]   ;;  %v1122_v12 = vld [vmem:[%s1385_s3 + $0x48] sm:$0xff]  }
   0xb   :  { %996 = vmatpush3.bf16.msra.mxu0 %v1106_v2  ;;  %v51_v35 = vsel %vm1225_vm2, %v46_v29, %v50_v14  ;;  %v61_v36 = vsel %vm1225_vm2, %v56_v30, %v60_v17  ;;  %v79_v39 = vor.u32 %v78_v34, %v74_v32  ;;  %1051 = vmatprep.subr.bf16.mxu1 %v1121_v51  ;;  %v284_v2 = vrot.slane %v1213_v18, 5  ;;  %v1124_v13 = vld [vmem:[%s1385_s3 + $0x50] sm:$0xff]   ;;  %v1126_v14 = vld [vmem:[%s1385_s3 + $0x58] sm:$0xff]   ;;  %v1127_v15 = vld [vmem:[%s1385_s3 + $0x28] sm:$0xff]  }
   0xc   :  { %997 = vmatprep.subr.bf16.mxu0 %v1107_v10  ;;  %v843_v38 = vcombine.low %v51_v35, %v61_v36  ;;  %v70_v41 = vrot.slane %v69_v37, 4  ;;  %v278_v61 = vsel %vm1264_vm6, %v859_v55, %v277_v50  ;;  %v281_v62 = vsel %vm1264_vm6, %v279_v57, %v280_v53  ;;  %v1129_v17 = vld [vmem:[%s1385_s3 + $0x30] sm:$0xff]   ;;  %v1133_v21 = vld [vmem:[%s1385_s3 + $0x80] sm:$0xff]   ;;  %v1134_v22 = vld [vmem:[%s1385_s3 + $0x78] sm:$0xff]  }
   0xd   :  { %v80_v42 = vrot.slane %v79_v39, 4  ;;  %v852_v63 = vcombine.low %v1208_v16, %v1213_v18  ;;  %v869_v1 = vcombine.low %v278_v61, %v281_v62  ;;  %v287_v4 = vrot.slane %v1218_v19, 5  ;;  %v1130_v18 = vld [vmem:[%s1385_s3 + $0x68] sm:$0xff]   ;;  %v1131_v19 = vld [vmem:[%s1385_s3 + $0x38] sm:$0xff]   ;;  %v1132_v20 = vld [vmem:[%s1385_s3 + $0x70] sm:$0xff]  }
   0xe   :  { %999 = vmatprep.mubr.msk.bf16.mxu0 %vm125_vm3, %v843_v38  ;;  %v75_v43 = vsel %vm1225_vm2, %v70_v41, %v74_v32  ;;  %1052 = vmatpush3.bf16.msra.mxu1 %v1121_v51  ;;  %v860_v5 = vrot.slane %v1208_v16, 9  ;;  %v286_v6 = vrot.slane %v284_v2, 4  ;;  %v1128_v16 = vld [vmem:[%s1385_s3 + $0x60] sm:$0xff]   ;;  %vm685_vm11 = vcmask 1046528   ;;  %v1135_v55 = vld [vmem:[%s1385_s3 + $0x88] sm:$0xff]  }
   0xf   :  { %998 = vmatpush3.bf16.msra.mxu0 %v1107_v10  ;;  %v85_v45 = vsel %vm1225_vm2, %v80_v42, %v84_v40  ;;  %1053 = vmatprep.subr.bf16.mxu1 %v1123_v58  ;;  %v1120_v10 = vld [vmem:[%s1385_s3 + $0x40] sm:$0xff]   ;;  %vm443_vm12 = vsmask.f32 7424 }
  0x10   :  { %1003 = vmatprep.subr.bf16.mxu0 %v1108_v33  ;;  %v844_v48 = vcombine.low %v75_v43, %v85_v45  ;;  %v285_v8 = vsel %vm1264_vm6, %v860_v5, %v284_v2  ;;  %v288_v9 = vsel %vm1264_vm6, %v286_v6, %v287_v4  ;;  %v877_v23 = vld [vmem:[%s1386_s2] ss:$0 sm:$0xff]  ;;  %v1136_v4 = vld [vmem:[%s1385_s3 + $0x90] sm:$0xff]  }
  0x11   :  { %v870_v11 = vcombine.low %v285_v8, %v288_v9 }
  0x12   :  { %1000 = vmatmul.mubr.msk.bf16.vlgmr.msra.gmra.mrb[0].mxu0 %vm125_vm3, %v844_v48  ;;  %1054 = vmatpush3.bf16.msra.mxu1 %v1123_v58 }
  0x13   :  { %1004 = vmatpush3.bf16.msra.mxu0 %v1108_v33  ;;  %1011 = vmatprep.mubr.msk.bf16.mxu0 %vm125_vm3, %v851_v46 }
  0x14   :  { %1005 = vmatprep.subr.bf16.mxu0 %v1109_v44  ;;  %1055 = vmatprep.subr.bf16.mxu1 %v1125_v59 }
  0x16   :  { %1056 = vmatpush3.bf16.msra.mxu1 %v1125_v59 }
  0x17   :  { %1006 = vmatpush3.bf16.msra.mxu0 %v1109_v44  ;;  %1057 = vmatprep.subr.bf16.mxu1 %v1127_v15 }
  0x18   :  { %1007 = vmatprep.subr.bf16.mxu0 %v1110_v52 }
  0x1a   :  { %1058 = vmatpush3.bf16.msra.mxu1 %v1127_v15 }
  0x1b   :  { %1008 = vmatpush3.bf16.msra.mxu0 %v1110_v52  ;;  %1059 = vmatprep.subr.bf16.mxu1 %v1129_v17 }
  0x1c   :  { %1009 = vmatprep.subr.bf16.mxu0 %v1111_v56 }
  0x1e   :  { %1060 = vmatpush3.bf16.msra.mxu1 %v1129_v17 }
  0x1f   :  { %1010 = vmatpush3.bf16.msra.mxu0 %v1111_v56  ;;  %1061 = vmatprep.subr.bf16.mxu1 %v1131_v19 }
  0x20   :  { %1015 = vmatprep.subr.bf16.mxu0 %v1113_v60 }
  0x22   :  { %1012 = vmatmul.mubr.msk.bf16.vlgmr.msra.gmra.mrb[0].mxu0 %vm125_vm3, %v852_v63  ;;  %1062 = vmatpush3.bf16.msra.mxu1 %v1131_v19 }
  0x23   :  { %1016 = vmatpush3.bf16.msra.mxu0 %v1113_v60  ;;  %1023 = vmatprep.mubr.msk.bf16.mxu0 %vm125_vm3, %v869_v1 }
  0x24   :  { %1017 = vmatprep.subr.bf16.mxu0 %v1115_v0  ;;  %1067 = vmatprep.subr.bf16.mxu1 %v1133_v21 }
  0x27   :  { %1018 = vmatpush3.bf16.msra.mxu0 %v1115_v0 }
  0x28   :  { %1019 = vmatprep.subr.bf16.mxu0 %v1116_v3 }
  0x2b   :  { %1020 = vmatpush3.bf16.msra.mxu0 %v1116_v3 }
  0x2c   :  { %1021 = vmatprep.subr.bf16.mxu0 %v1117_v7 }
  0x2f   :  { %1022 = vmatpush3.bf16.msra.mxu0 %v1117_v7 }
  0x30   :  { %1027 = vmatprep.subr.bf16.mxu0 %v1120_v10 }
  0x32   :  { %1024 = vmatmul.mubr.msk.bf16.vlgmr.msra.gmra.mrb[0].mxu0 %vm125_vm3, %v870_v11  ;;  %v1138_v11 = vld [vmem:[%s1385_s3 + $0xa0] sm:$0xff]  }
  0x33   :  { %1028 = vmatpush3.bf16.msra.mxu0 %v1120_v10  ;;  %v1137_v10 = vld [vmem:[%s1385_s3 + $0x98] sm:$0xff]  }
  0x34   :  { %1029 = vmatprep.subr.bf16.mxu0 %v1122_v12 }
  0x37   :  { %1030 = vmatpush3.bf16.msra.mxu0 %v1122_v12  ;;  %v1139_v12 = vld [vmem:[%s1385_s3 + $0xa8] sm:$0xff]  }
  0x38   :  { %1031 = vmatprep.subr.bf16.mxu0 %v1124_v13 }
  0x3b   :  { %1032 = vmatpush3.bf16.msra.mxu0 %v1124_v13  ;;  %v1140_v13 = vld [vmem:[%s1385_s3 + $0xb0] sm:$0xff]  }
  0x3c   :  { %1033 = vmatprep.subr.bf16.mxu0 %v1126_v14 }
  0x3f   :  { %1034 = vmatpush3.bf16.msra.mxu0 %v1126_v14  ;;  %v1141_v14 = vld [vmem:[%s1385_s3 + $0xb8] sm:$0xff]  }
  0x40   :  { %1035 = vmatprep.subr.bf16.mxu0 %v1128_v16 }
  0x43   :  { %1036 = vmatpush3.bf16.msra.mxu0 %v1128_v16 }
  0x44   :  { %1037 = vmatprep.subr.bf16.mxu0 %v1130_v18 }
  0x47   :  { %1038 = vmatpush3.bf16.msra.mxu0 %v1130_v18 }
  0x48   :  { %1039 = vmatprep.subr.bf16.mxu0 %v1132_v20 }
  0x4b   :  { %1040 = vmatpush3.bf16.msra.mxu0 %v1132_v20  ;;  %v942_v20 = vld [vmem:[%s1387_s4] ss:$0 sm:$0xff] }
  0x4c   :  { %1041 = vmatprep.subr.bf16.mxu0 %v1134_v22 }
  0x4f   :  { %1042 = vmatpush3.bf16.msra.mxu0 %v1134_v22 }
 0x105   :  { %v1025_v24 = vpop.f32.mrb[0].mxu0 }
 0x106   :  { %v396_v25 = vadd.f32 %v1025_v24, %v877_v23  ;;  %v368_v26 = vpop.f32.mrb[1].mxu0 }
 0x107   :  { %v394_v27 = vadd.f32 %v877_v23, %v368_v26  ;;  %v1026_v28 = vpop.f32.mrb[2].mxu0 }
 0x108   :  { %v400_v29 = vmax.f32 %v396_v25, 0.0  ;;  %v397_v30 = vadd.f32 %v1026_v28, %v877_v23  ;;  %v371_v31 = vpop.f32.mrb[3].mxu0 }
 0x109   :  { %v398_v32 = vmax.f32 %v394_v27, 0.0  ;;  %v395_v33 = vadd.f32 %v877_v23, %v371_v31 }
 0x10a   :  { %v410_v34 = vrot.slane %v400_v29, 7  ;;  %v401_v35 = vmax.f32 %v397_v30, 0.0 }
 0x10b   :  { %v399_v36 = vmax.f32 %v395_v33, 0.0  ;;  %v407_v37 = vrot.slane %v398_v32, 7 }
 0x10c   :  { %v411_v38 = vrot.slane %v401_v35, 7  ;;  %v420_v40 = vsel %vm406_vm7, 0.0, %v410_v34 }
 0x10d   :  { %v408_v39 = vrot.slane %v399_v36, 7  ;;  %v419_v49 = vsel %vm406_vm7, 0.0, %v407_v37 }
 0x10e   :  { %v412_v41 = vsel %vm406_vm7, %v410_v34, %v411_v38  ;;  %v422_v42 = vsel %vm406_vm7, %v411_v38, 0.0 }
 0x10f   :  { %v425_v43 = vpack.c.bf16 %v412_v41, %v420_v40  ;;  %v426_v44 = vpack.c.bf16 %v422_v42, %v422_v42  ;;  %v916_v45 = vpack.c.bf16 %v412_v41, %v410_v34  ;;  %v421_v46 = vsel %vm406_vm7, %v408_v39, 0.0 }
 0x110   :  { %v424_v47 = vpack.c.bf16 %v421_v46, %v421_v46  ;;  %v409_v48 = vsel %vm406_vm7, %v407_v37, %v408_v39 }
 0x111   :  { %v423_v50 = vpack.c.bf16 %v409_v48, %v419_v49  ;;  %v912_v51 = vpack.c.bf16 %v409_v48, %v407_v37  ;;  %v464_v52 = vshll.u32 %v426_v44, 16  ;;  %v690_v53 = vrot.slane %v426_v44, 1 }
 0x112   :  { %v687_v54 = vrot.slane %v424_v47, 1  ;;  %v459_v56 = vshll.u32 %v425_v43, 16  ;;  %v452_v57 = vshll.u32 %v424_v47, 16  ;;  %v457_v60 = vshrl.u32 %v425_v43, 16 }
 0x113   :  { %v447_v58 = vshll.u32 %v423_v50, 16  ;;  %1063 = vmatprep.mubr.msk.bf16.mxu1 %vm911_vm10, %v912_v51  ;;  %v686_v59 = vrot.slane %v423_v50, 1  ;;  %v689_v62 = vrot.slane %v425_v43, 1  ;;  %v445_v63 = vshrl.u32 %v423_v50, 16 }
 0x114   :  { %1064 = vmatmul.mubr.msk.bf16.vlgmr.msra.gmra.mrb[0].mxu1 %vm911_vm10, %v916_v45  ;;  %v461_v61 = vrot.slane %v459_v56, 1  ;;  %v466_v2 = vrot.slane %v464_v52, 1  ;;  %v454_v7 = vrot.slane %v452_v57, 1 }
 0x115   :  { %1068 = vmatpush3.bf16.msra.mxu1 %v1133_v21  ;;  %v688_v0 = vsel %vm685_vm11, %v686_v59, %v687_v54  ;;  %v449_v1 = vrot.slane %v447_v58, 1  ;;  %v691_v5 = vsel %vm685_vm11, %v689_v62, %v690_v53 }
 0x116   :  { %1083 = vmatprep.mubr.bf16.mxu1 %v688_v0  ;;  %1069 = vmatprep.subr.bf16.mxu1 %v1135_v55  ;;  %v462_v3 = vor.u32 %v461_v61, %v457_v60 }
 0x117   :  { %v450_v6 = vor.u32 %v449_v1, %v445_v63 }
 0x118   :  { %v467_v8 = vsel %vm443_vm12, %v462_v3, %v466_v2 }
 0x119   :  { %1070 = vmatpush3.bf16.msra.mxu1 %v1135_v55  ;;  %v455_v9 = vsel %vm443_vm12, %v450_v6, %v454_v7 }
 0x11a   :  { %1043 = vmatprep.mubr.bf16.mxu0 %v455_v9  ;;  %1071 = vmatprep.subr.bf16.mxu1 %v1136_v4 }
 0x11b   :  { %1044 = vmatmul.mubr.bf16.vlgmr.msra.gmra.mrb[4].mxu0 %v467_v8 }
 0x11d   :  { %1072 = vmatpush3.bf16.msra.mxu1 %v1136_v4 }
 0x11e   :  { %1073 = vmatprep.subr.bf16.mxu1 %v1137_v10 }
 0x121   :  { %1074 = vmatpush3.bf16.msra.mxu1 %v1137_v10 }
 0x122   :  { %1075 = vmatprep.subr.bf16.mxu1 %v1138_v11 }
 0x125   :  { %1076 = vmatpush3.bf16.msra.mxu1 %v1138_v11 }
 0x126   :  { %1077 = vmatprep.subr.bf16.mxu1 %v1139_v12 }
 0x129   :  { %1078 = vmatpush3.bf16.msra.mxu1 %v1139_v12 }
 0x12a   :  { %1079 = vmatprep.subr.bf16.mxu1 %v1140_v13 }
 0x12d   :  { %1080 = vmatpush3.bf16.msra.mxu1 %v1140_v13 }
 0x12e   :  { %1081 = vmatprep.subr.bf16.mxu1 %v1141_v14 }
 0x131   :  { %1082 = vmatpush3.bf16.msra.mxu1 %v1141_v14 }
 0x134   :  { %1084 = vmatmul.mubr.bf16.vlgmr.msra.gmra.mrb[0].mxu1 %v691_v5 }
 0x1ee   :  { %v1045_v15 = vpop.f32.mrb[4].mxu0 }
 0x1ef   :  { %v569_v16 = vpop.f32.mrb[5].mxu0 }
 0x1f0   :  { %v1046_v17 = vpop.f32.mrb[6].mxu0 }
 0x1f1   :  { %v572_v18 = vpop.f32.mrb[7].mxu0 }
 0x207   :  { %v1085_v19 = vpop.f32.mrb[0].mxu1 }
 0x208   :  { %v1087_v21 = vadd.f32 %v1085_v19, %v1045_v15  ;;  %v793_v22 = vpop.f32.mrb[1].mxu1 }
 0x209   :  { %v1088_v23 = vadd.f32 %v793_v22, %v569_v16  ;;  %v1086_v24 = vpop.f32.mrb[2].mxu1 }
 0x20a   :  { %v821_v25 = vadd.f32 %v1087_v21, %v942_v20  ;;  %v1089_v26 = vadd.f32 %v1086_v24, %v1046_v17  ;;  %v796_v27 = vpop.f32.mrb[3].mxu1 }
 0x20b   :  { %v819_v28 = vadd.f32 %v1088_v23, %v942_v20  ;;  %v1090_v29 = vadd.f32 %v796_v27, %v572_v18 }
 0x20c   :  { %v825_v30 = vmax.f32 %v821_v25, 0.0  ;;  %v822_v31 = vadd.f32 %v1089_v26, %v942_v20 }
 0x20d   :  { %v823_v32 = vmax.f32 %v819_v28, 0.0  ;;  %v820_v33 = vadd.f32 %v1090_v29, %v942_v20 }
 0x20e   :  { %829 = vst [vmem:[%s1388_s5 + $0x10] sm:$0xff] %v825_v30  ;;  %v826_v34 = vmax.f32 %v822_v31, 0.0 }
 0x20f   :  { %827 = vst [vmem:[%s1388_s5] sm:$0xff] %v823_v32  ;;  %v824_v35 = vmax.f32 %v820_v33, 0.0 }
 0x210   :  { %830 = vst [vmem:[%s1388_s5 + $0x18] sm:$0xff] %v826_v34 }
 0x211   :  { %828 = vst [vmem:[%s1388_s5 + $0x8] sm:$0xff] %v824_v35 }

</bundles_post_ra>
